<compile_context>
chip_gen: v5e
topology: v5e:2x2
jax: 0.10.0
libtpu: 0.0.40
codegen_flags: <defaults>
</compile_context>

<pallas_src>
import jax
import jax.numpy as jnp
from jax.experimental import pallas as pl
from jax.experimental.pallas import tpu as pltpu


def _fc_kernel(x_ref,
               w1_ref, b1_ref,
               w2_ref, b2_ref,
               w3_ref, b3_ref,
               w4_ref, b4_ref,
               o_ref):
    """Fused 4-layer MLP on one (TB, in) batch tile. All widths 128-padded."""
    x = x_ref[...]                      # (TB, in_size) f32

    h = jnp.dot(x, w1_ref[...], preferred_element_type=jnp.float32) + b1_ref[...]
    h = jnp.maximum(h, 0.0)
    # dropout(p=0.25): identity in eval mode

    h = jnp.dot(h, w2_ref[...], preferred_element_type=jnp.float32) + b2_ref[...]
    h = jnp.maximum(h, 0.0)

    h = jnp.dot(h, w3_ref[...], preferred_element_type=jnp.float32) + b3_ref[...]
    h = jnp.maximum(h, 0.0)

    h = jnp.dot(h, w4_ref[...], preferred_element_type=jnp.float32) + b4_ref[...]

    o_ref[...] = h.astype(o_ref.dtype)  # (TB, out_pad) lane-dense store


def _round_up(x, m):
    return ((x + m - 1) // m) * m


def fc_forward(x, params, *, block_b=1024):
    """params: dict with w1..w4 shaped (in, out) and b1..b4 shaped (1, out)."""
    B, in_size = x.shape
    out_size = params["w4"].shape[1]

    # --- pad every layer width to a multiple of 128 lanes (exact: zeros) ---
    H1, H2, H3 = 128, 128, 128
    out_pad = _round_up(out_size, 128)

    def pad2(a, rows, cols):
        r, c = a.shape
        return jnp.pad(a, ((0, rows - r), (0, cols - c)))

    w1 = pad2(params["w1"], in_size, H1)
    b1 = pad2(params["b1"], 1, H1)
    w2 = pad2(params["w2"], H1, H2)
    b2 = pad2(params["b2"], 1, H2)
    w3 = pad2(params["w3"], H2, H3)
    b3 = pad2(params["b3"], 1, H3)
    w4 = pad2(params["w4"], H3, out_pad)
    b4 = pad2(params["b4"], 1, out_pad)

    # --- batch tiling: TB multiple of 8, pad B up to a multiple of TB ------
    TB = _round_up(min(block_b, _round_up(B, 8)), 8)
    B_pad = _round_up(B, TB)
    if B_pad != B:
        x = jnp.pad(x, ((0, B_pad - B), (0, 0)))

    grid = (B_pad // TB,)
    const = lambda i: (0, 0)  # weights/biases: resident, never re-indexed

    out = pl.pallas_call(
        _fc_kernel,
        out_shape=jax.ShapeDtypeStruct((B_pad, out_pad), jnp.float32),
        grid=grid,
        in_specs=[
            pl.BlockSpec((TB, in_size), lambda i: (i, 0)),   # streamed x tile
            pl.BlockSpec(w1.shape, const), pl.BlockSpec(b1.shape, const),
            pl.BlockSpec(w2.shape, const), pl.BlockSpec(b2.shape, const),
            pl.BlockSpec(w3.shape, const), pl.BlockSpec(b3.shape, const),
            pl.BlockSpec(w4.shape, const), pl.BlockSpec(b4.shape, const),
        ],
        out_specs=pl.BlockSpec((TB, out_pad), lambda i: (i, 0)),
        compiler_params=pltpu.CompilerParams(
            dimension_semantics=("parallel",),          # shard batch across TCs (v7x)
            vmem_limit_bytes=48 * 1024 * 1024,          # safe under v7x 64 MiB VMEM
        ),
    )(x, w1, b1, w2, b2, w3, b3, w4, b4)

    # slice off batch-tail and output-lane padding
    return out[:B, :out_size]


def init_fc_params(key, in_size, out_size):
    """Deterministic init mimicking torch.nn.Linear (U(-1/sqrt(fan_in), +))."""
    dims = [(in_size, 128), (128, 64), (64, 32), (32, out_size)]
    params = {}
    for i, (fan_in, fan_out) in enumerate(dims, start=1):
        key, kw, kb = jax.random.split(key, 3)
        bound = 1.0 / jnp.sqrt(fan_in)
        params[f"w{i}"] = jax.random.uniform(
            kw, (fan_in, fan_out), jnp.float32, -bound, bound)
        params[f"b{i}"] = jax.random.uniform(
            kb, (1, fan_out), jnp.float32, -bound, bound)
    return params


def fc_reference(x, params):
    """Plain-JAX reference for correctness checking."""
    h = jnp.maximum(x @ params["w1"] + params["b1"], 0.0)
    h = jnp.maximum(h @ params["w2"] + params["b2"], 0.0)
    h = jnp.maximum(h @ params["w3"] + params["b3"], 0.0)
    return h @ params["w4"] + params["b4"]


if __name__ == "__main__":
    key = jax.random.PRNGKey(0)
    k_param, k_x1, k_x2 = jax.random.split(key, 3)

    in_size, out_size = 32, 16
    params = init_fc_params(k_param, in_size, out_size)

    fwd = jax.jit(fc_forward)

    # case 1: small batch, exactly tile-aligned
    x1 = jax.random.normal(k_x1, (8, in_size), jnp.float32)
    out1 = jax.block_until_ready(fwd(x1, params))
    ref1 = fc_reference(x1, params)
    assert out1.shape == (8, out_size)
    assert jnp.allclose(out1, ref1, atol=1e-4, rtol=1e-4)

    # case 2: batch not divisible by the tile size (exercises tail padding)
    x2 = jax.random.normal(k_x2, (13, in_size), jnp.float32)
    out2 = jax.block_until_ready(fwd(x2, params))
    ref2 = fc_reference(x2, params)
    assert out2.shape == (13, out_size)
    assert jnp.allclose(out2, ref2, atol=1e-4, rtol=1e-4)

    print("KERNEL_OK")
</pallas_src>

<mosaic_0001>
module attributes {stable_mosaic.version = 11 : i64} {
  func.func @_fc_kernel(%arg0: i32, %arg1: memref<8x32xf32, #tpu.memory_space<vmem>>, %arg2: memref<32x128xf32, #tpu.memory_space<vmem>>, %arg3: memref<1x128xf32, #tpu.memory_space<vmem>>, %arg4: memref<128x128xf32, #tpu.memory_space<vmem>>, %arg5: memref<1x128xf32, #tpu.memory_space<vmem>>, %arg6: memref<128x128xf32, #tpu.memory_space<vmem>>, %arg7: memref<1x128xf32, #tpu.memory_space<vmem>>, %arg8: memref<128x128xf32, #tpu.memory_space<vmem>>, %arg9: memref<1x128xf32, #tpu.memory_space<vmem>>, %arg10: memref<8x128xf32, #tpu.memory_space<vmem>>) attributes {dimension_semantics = [#tpu.dimension_semantics<parallel>], iteration_bounds = array<i64: 1>, scalar_prefetch = 0 : i64, scratch_operands = 0 : i64, tpu.core_type = #tpu.core_type<tc>, window_params = [{transform_indices = @transform_0, window_bounds = array<i64: 8, 32>}, {pipeline_mode = #tpu.pipeline_mode<synchronous>, transform_indices = @transform_1, window_bounds = array<i64: 32, 128>}, {pipeline_mode = #tpu.pipeline_mode<synchronous>, transform_indices = @transform_2, window_bounds = array<i64: 1, 128>}, {pipeline_mode = #tpu.pipeline_mode<synchronous>, transform_indices = @transform_3, window_bounds = array<i64: 128, 128>}, {pipeline_mode = #tpu.pipeline_mode<synchronous>, transform_indices = @transform_4, window_bounds = array<i64: 1, 128>}, {pipeline_mode = #tpu.pipeline_mode<synchronous>, transform_indices = @transform_5, window_bounds = array<i64: 128, 128>}, {pipeline_mode = #tpu.pipeline_mode<synchronous>, transform_indices = @transform_6, window_bounds = array<i64: 1, 128>}, {pipeline_mode = #tpu.pipeline_mode<synchronous>, transform_indices = @transform_7, window_bounds = array<i64: 128, 128>}, {pipeline_mode = #tpu.pipeline_mode<synchronous>, transform_indices = @transform_8, window_bounds = array<i64: 1, 128>}, {transform_indices = @transform_9, window_bounds = array<i64: 8, 128>}]} {
    %c0 = arith.constant 0 : index
    %c0_0 = arith.constant 0 : index
    %0 = vector.load %arg1[%c0, %c0_0] : memref<8x32xf32, #tpu.memory_space<vmem>>, vector<8x32xf32>
    %c0_1 = arith.constant 0 : index
    %c0_2 = arith.constant 0 : index
    %1 = vector.load %arg2[%c0_1, %c0_2] : memref<32x128xf32, #tpu.memory_space<vmem>>, vector<32x128xf32>
    %cst = arith.constant dense<0.000000e+00> : vector<8x128xf32>
    %2 = tpu.matmul %0, %1, %cst {dimension_numbers = #tpu.dot_dimension_numbers<[1], [0], [0], [1], [0, 0, 1, 1], [], []>} : vector<8x32xf32>, vector<32x128xf32>, vector<8x128xf32> -> vector<8x128xf32>
    %c0_3 = arith.constant 0 : index
    %c0_4 = arith.constant 0 : index
    %3 = vector.load %arg3[%c0_3, %c0_4] : memref<1x128xf32, #tpu.memory_space<vmem>>, vector<1x128xf32>
    %4 = vector.broadcast %3 : vector<1x128xf32> to vector<8x128xf32>
    %5 = arith.addf %2, %4 : vector<8x128xf32>
    %cst_5 = arith.constant 0.000000e+00 : f32
    %6 = vector.broadcast %cst_5 : f32 to vector<8x128xf32>
    %7 = arith.maximumf %5, %6 : vector<8x128xf32>
    %c0_6 = arith.constant 0 : index
    %c0_7 = arith.constant 0 : index
    %8 = vector.load %arg4[%c0_6, %c0_7] : memref<128x128xf32, #tpu.memory_space<vmem>>, vector<128x128xf32>
    %cst_8 = arith.constant dense<0.000000e+00> : vector<8x128xf32>
    %9 = tpu.matmul %7, %8, %cst_8 {dimension_numbers = #tpu.dot_dimension_numbers<[1], [0], [0], [1], [0, 0, 1, 1], [], []>} : vector<8x128xf32>, vector<128x128xf32>, vector<8x128xf32> -> vector<8x128xf32>
    %c0_9 = arith.constant 0 : index
    %c0_10 = arith.constant 0 : index
    %10 = vector.load %arg5[%c0_9, %c0_10] : memref<1x128xf32, #tpu.memory_space<vmem>>, vector<1x128xf32>
    %11 = vector.broadcast %10 : vector<1x128xf32> to vector<8x128xf32>
    %12 = arith.addf %9, %11 : vector<8x128xf32>
    %cst_11 = arith.constant 0.000000e+00 : f32
    %13 = vector.broadcast %cst_11 : f32 to vector<8x128xf32>
    %14 = arith.maximumf %12, %13 : vector<8x128xf32>
    %c0_12 = arith.constant 0 : index
    %c0_13 = arith.constant 0 : index
    %15 = vector.load %arg6[%c0_12, %c0_13] : memref<128x128xf32, #tpu.memory_space<vmem>>, vector<128x128xf32>
    %cst_14 = arith.constant dense<0.000000e+00> : vector<8x128xf32>
    %16 = tpu.matmul %14, %15, %cst_14 {dimension_numbers = #tpu.dot_dimension_numbers<[1], [0], [0], [1], [0, 0, 1, 1], [], []>} : vector<8x128xf32>, vector<128x128xf32>, vector<8x128xf32> -> vector<8x128xf32>
    %c0_15 = arith.constant 0 : index
    %c0_16 = arith.constant 0 : index
    %17 = vector.load %arg7[%c0_15, %c0_16] : memref<1x128xf32, #tpu.memory_space<vmem>>, vector<1x128xf32>
    %18 = vector.broadcast %17 : vector<1x128xf32> to vector<8x128xf32>
    %19 = arith.addf %16, %18 : vector<8x128xf32>
    %cst_17 = arith.constant 0.000000e+00 : f32
    %20 = vector.broadcast %cst_17 : f32 to vector<8x128xf32>
    %21 = arith.maximumf %19, %20 : vector<8x128xf32>
    %c0_18 = arith.constant 0 : index
    %c0_19 = arith.constant 0 : index
    %22 = vector.load %arg8[%c0_18, %c0_19] : memref<128x128xf32, #tpu.memory_space<vmem>>, vector<128x128xf32>
    %cst_20 = arith.constant dense<0.000000e+00> : vector<8x128xf32>
    %23 = tpu.matmul %21, %22, %cst_20 {dimension_numbers = #tpu.dot_dimension_numbers<[1], [0], [0], [1], [0, 0, 1, 1], [], []>} : vector<8x128xf32>, vector<128x128xf32>, vector<8x128xf32> -> vector<8x128xf32>
    %c0_21 = arith.constant 0 : index
    %c0_22 = arith.constant 0 : index
    %24 = vector.load %arg9[%c0_21, %c0_22] : memref<1x128xf32, #tpu.memory_space<vmem>>, vector<1x128xf32>
    %25 = vector.broadcast %24 : vector<1x128xf32> to vector<8x128xf32>
    %26 = arith.addf %23, %25 : vector<8x128xf32>
    %c0_23 = arith.constant 0 : index
    %c0_24 = arith.constant 0 : index
    %27 = vector.load %arg10[%c0_23, %c0_24] : memref<8x128xf32, #tpu.memory_space<vmem>>, vector<8x128xf32>
    tpu.vector_store %arg10[%c0_23, %c0_24], %26 {strides = array<i32>} : memref<8x128xf32, #tpu.memory_space<vmem>>, vector<8x128xf32>,
    return
  }
  func.func @transform_0(%arg0: i32) -> (i32, i32) {
    %c0_i32 = arith.constant 0 : i32
    %c0_i32_0 = arith.constant 0 : i32
    return %arg0, %c0_i32 : i32, i32
  }
  func.func @transform_1(%arg0: i32) -> (i32, i32) {
    %c0_i32 = arith.constant 0 : i32
    %c0_i32_0 = arith.constant 0 : i32
    %c0_i32_1 = arith.constant 0 : i32
    return %c0_i32, %c0_i32_0 : i32, i32
  }
  func.func @transform_2(%arg0: i32) -> (i32, i32) {
    %c0_i32 = arith.constant 0 : i32
    %c0_i32_0 = arith.constant 0 : i32
    %c0_i32_1 = arith.constant 0 : i32
    return %c0_i32, %c0_i32_0 : i32, i32
  }
  func.func @transform_3(%arg0: i32) -> (i32, i32) {
    %c0_i32 = arith.constant 0 : i32
    %c0_i32_0 = arith.constant 0 : i32
    %c0_i32_1 = arith.constant 0 : i32
    return %c0_i32, %c0_i32_0 : i32, i32
  }
  func.func @transform_4(%arg0: i32) -> (i32, i32) {
    %c0_i32 = arith.constant 0 : i32
    %c0_i32_0 = arith.constant 0 : i32
    %c0_i32_1 = arith.constant 0 : i32
    return %c0_i32, %c0_i32_0 : i32, i32
  }
  func.func @transform_5(%arg0: i32) -> (i32, i32) {
    %c0_i32 = arith.constant 0 : i32
    %c0_i32_0 = arith.constant 0 : i32
    %c0_i32_1 = arith.constant 0 : i32
    return %c0_i32, %c0_i32_0 : i32, i32
  }
  func.func @transform_6(%arg0: i32) -> (i32, i32) {
    %c0_i32 = arith.constant 0 : i32
    %c0_i32_0 = arith.constant 0 : i32
    %c0_i32_1 = arith.constant 0 : i32
    return %c0_i32, %c0_i32_0 : i32, i32
  }
  func.func @transform_7(%arg0: i32) -> (i32, i32) {
    %c0_i32 = arith.constant 0 : i32
    %c0_i32_0 = arith.constant 0 : i32
    %c0_i32_1 = arith.constant 0 : i32
    return %c0_i32, %c0_i32_0 : i32, i32
  }
  func.func @transform_8(%arg0: i32) -> (i32, i32) {
    %c0_i32 = arith.constant 0 : i32
    %c0_i32_0 = arith.constant 0 : i32
    %c0_i32_1 = arith.constant 0 : i32
    return %c0_i32, %c0_i32_0 : i32, i32
  }
  func.func @transform_9(%arg0: i32) -> (i32, i32) {
    %c0_i32 = arith.constant 0 : i32
    %c0_i32_0 = arith.constant 0 : i32
    return %arg0, %c0_i32 : i32, i32
  }
}

</mosaic_0001>

<bundles_post_ra>
// kernel: fc_forward.1
= control target key start
LH: loop header
LB: loop body
LE: loop exit
PB: predicated region body
PF: predicated region fallthrough
CT: control target
= control target key end

     0   :  { %vm42_vm0 = vcmask 261120   ;;  %s463_s0 = inlined_call_operand.vmem [shape: f32[8,32], index: 0, kind: input, shape index: {}]   ;;  %s464_s1 = inlined_call_operand.vmem [shape: f32[32,128], index: 1, kind: input, shape index: {}]   ;;  %s465_s2 = inlined_call_operand.vmem [shape: f32[1,128], index: 2, kind: input, shape index: {}]   ;;  %s466_s3 = inlined_call_operand.vmem [shape: f32[128,128], index: 3, kind: input, shape index: {}]   ;;  %s467_s4 = inlined_call_operand.vmem [shape: f32[1,128], index: 4, kind: input, shape index: {}]   ;;  %s468_s5 = inlined_call_operand.vmem [shape: f32[128,128], index: 5, kind: input, shape index: {}]   ;;  %s469_s6 = inlined_call_operand.vmem [shape: f32[1,128], index: 6, kind: input, shape index: {}]   ;;  %s470_s7 = inlined_call_operand.vmem [shape: f32[128,128], index: 7, kind: input, shape index: {}]   ;;  %s471_s8 = inlined_call_operand.vmem [shape: f32[1,128], index: 8, kind: input, shape index: {}]   ;;  %s472_s9 = inlined_call_operand.hbm [shape: f32[8,128], index: 9, kind: output, shape index: {}]  }
   0x1   :  { %v37_v0 = vld [vmem:[%s464_s1 + $0x18] sm:$0xff]  ;;  %v36_v1 = vld [vmem:[%s464_s1 + $0x10] sm:$0xff]  ;;  %v35_v3 = vld [vmem:[%s464_s1 + $0x8] sm:$0xff] }
   0x2   :  { %58 = vmatpush.msra.mxu0 %v37_v0  ;;  %v82_v2 = vld [vmem:[%s466_s3 + $0x78] sm:$0xff]  ;;  %v81_v4 = vld [vmem:[%s466_s3 + $0x70] sm:$0xff]  ;;  %v80_v5 = vld [vmem:[%s466_s3 + $0x68] sm:$0xff] }
   0x3   :  { %87 = vmatpush.msra.mxu1 %v82_v2  ;;  %v34_v6 = vld [vmem:[%s464_s1] sm:$0xff]  ;;  %v78_v9 = vld [vmem:[%s466_s3 + $0x58] sm:$0xff] }
   0x4   :  { %59 = vmatpush.msra.mxu0 %v36_v1  ;;  %v33_v7 = vld [vmem:[%s463_s0] sm:$0xff] }
   0x5   :  { %88 = vmatpush.msra.mxu1 %v81_v4  ;;  %v79_v8 = vld [vmem:[%s466_s3 + $0x60] sm:$0xff] }
   0x6   :  { %60 = vmatpush.msra.mxu0 %v35_v3 }
   0x7   :  { %89 = vmatpush.msra.mxu1 %v80_v5 }
   0x8   :  { %61 = vmatpush.msra.mxu0 %v34_v6 }
   0x9   :  { %14 = vsyncpa [#allocation3], 0  ;;  %206 = vmatmul.msk.f32.vlgmr.msra.gmra.mxu0 %vm42_vm0, %v33_v7  ;;  %90 = vmatpush.msra.mxu1 %v79_v8  ;;  %v77_v10 = vld [vmem:[%s466_s3 + $0x50] sm:$0xff]  ;;  %v76_v11 = vld [vmem:[%s466_s3 + $0x48] sm:$0xff]  ;;  %s238_s23 = smov [#allocation2]   ;;  %s197_s27 = sshll.u32 %s472_s9, 4  ;;  %s198_s27 = int_to_ptr.hbm [resolvable:$true] %s197_s27 }
   0xa   :  { %v75_v12 = vld [vmem:[%s466_s3 + $0x40] sm:$0xff]  ;;  %v74_v13 = vld [vmem:[%s466_s3 + $0x38] sm:$0xff]  ;;  %v73_v14 = vld [vmem:[%s466_s3 + $0x30] sm:$0xff]  ;;  %s195_s24 = sshll.u32 %s238_s23, 4  ;;  %s196_s24 = int_to_ptr.vmem [resolvable:$true] %s195_s24 }
   0xb   :  { %91 = vmatpush.msra.mxu1 %v78_v9  ;;  %v72_v15 = vld [vmem:[%s466_s3 + $0x28] sm:$0xff]  ;;  %v71_v16 = vld [vmem:[%s466_s3 + $0x20] sm:$0xff]  ;;  %v70_v17 = vld [vmem:[%s466_s3 + $0x18] sm:$0xff] }
   0xc   :  { %v69_v18 = vld [vmem:[%s466_s3 + $0x10] sm:$0xff]  ;;  %v68_v19 = vld [vmem:[%s466_s3 + $0x8] sm:$0xff]  ;;  %v67_v20 = vld [vmem:[%s466_s3] sm:$0xff] }
   0xd   :  { %92 = vmatpush.msra.mxu1 %v77_v10  ;;  %v123_v21 = vld [vmem:[%s468_s5 + $0x78] sm:$0xff]  ;;  %v122_v22 = vld [vmem:[%s468_s5 + $0x70] sm:$0xff]  ;;  %v121_v23 = vld [vmem:[%s468_s5 + $0x68] sm:$0xff] }
   0xe   :  { %128 = vmatpush.msra.mxu2 %v123_v21  ;;  %v120_v24 = vld [vmem:[%s468_s5 + $0x60] sm:$0xff]  ;;  %v119_v25 = vld [vmem:[%s468_s5 + $0x58] sm:$0xff]  ;;  %v118_v26 = vld [vmem:[%s468_s5 + $0x50] sm:$0xff] }
   0xf   :  { %93 = vmatpush.msra.mxu1 %v76_v11  ;;  %v117_v27 = vld [vmem:[%s468_s5 + $0x48] sm:$0xff]  ;;  %v116_v28 = vld [vmem:[%s468_s5 + $0x40] sm:$0xff]  ;;  %v115_v29 = vld [vmem:[%s468_s5 + $0x38] sm:$0xff] }
  0x10   :  { %129 = vmatpush.msra.mxu2 %v122_v22  ;;  %v114_v30 = vld [vmem:[%s468_s5 + $0x30] sm:$0xff]  ;;  %v113_v31 = vld [vmem:[%s468_s5 + $0x28] sm:$0xff]  ;;  %v112_v32 = vld [vmem:[%s468_s5 + $0x20] sm:$0xff] }
  0x11   :  { %94 = vmatpush.msra.mxu1 %v75_v12  ;;  %v111_v33 = vld [vmem:[%s468_s5 + $0x18] sm:$0xff]  ;;  %v208_v34 = vld [vmem:[%s465_s2] ss:$0 sm:$0xff]  ;;  %v110_v38 = vld [vmem:[%s468_s5 + $0x10] sm:$0xff] }
  0x12   :  { %130 = vmatpush.msra.mxu2 %v121_v23  ;;  %v109_v39 = vld [vmem:[%s468_s5 + $0x8] sm:$0xff]  ;;  %v108_v40 = vld [vmem:[%s468_s5] sm:$0xff]  ;;  %v164_v41 = vld [vmem:[%s470_s7 + $0x78] sm:$0xff] }
  0x13   :  { %95 = vmatpush.msra.mxu1 %v74_v13  ;;  %v163_v42 = vld [vmem:[%s470_s7 + $0x70] sm:$0xff]  ;;  %169 = vmatpush.msra.mxu3 %v164_v41  ;;  %v162_v43 = vld [vmem:[%s470_s7 + $0x68] sm:$0xff]  ;;  %v161_v44 = vld [vmem:[%s470_s7 + $0x60] sm:$0xff] }
  0x14   :  { %131 = vmatpush.msra.mxu2 %v120_v24  ;;  %v160_v45 = vld [vmem:[%s470_s7 + $0x58] sm:$0xff]  ;;  %v159_v46 = vld [vmem:[%s470_s7 + $0x50] sm:$0xff]  ;;  %v158_v47 = vld [vmem:[%s470_s7 + $0x48] sm:$0xff] }
  0x15   :  { %96 = vmatpush.msra.mxu1 %v73_v14  ;;  %170 = vmatpush.msra.mxu3 %v163_v42  ;;  %v157_v48 = vld [vmem:[%s470_s7 + $0x40] sm:$0xff]  ;;  %v156_v49 = vld [vmem:[%s470_s7 + $0x38] sm:$0xff]  ;;  %v155_v50 = vld [vmem:[%s470_s7 + $0x30] sm:$0xff] }
  0x16   :  { %132 = vmatpush.msra.mxu2 %v119_v25  ;;  %v154_v51 = vld [vmem:[%s470_s7 + $0x28] sm:$0xff]  ;;  %v153_v52 = vld [vmem:[%s470_s7 + $0x20] sm:$0xff]  ;;  %v152_v53 = vld [vmem:[%s470_s7 + $0x18] sm:$0xff] }
  0x17   :  { %97 = vmatpush.msra.mxu1 %v72_v15  ;;  %171 = vmatpush.msra.mxu3 %v162_v43  ;;  %v209_v54 = vld [vmem:[%s467_s4] ss:$0 sm:$0xff]  ;;  %v151_v58 = vld [vmem:[%s470_s7 + $0x10] sm:$0xff]  ;;  %v150_v59 = vld [vmem:[%s470_s7 + $0x8] sm:$0xff] }
  0x18   :  { %133 = vmatpush.msra.mxu2 %v118_v26  ;;  %v149_v60 = vld [vmem:[%s470_s7] sm:$0xff] }
  0x19   :  { %98 = vmatpush.msra.mxu1 %v71_v16  ;;  %172 = vmatpush.msra.mxu3 %v161_v44  ;;  %v210_v61 = vld [vmem:[%s469_s6] ss:$0 sm:$0xff] }
  0x1a   :  { %134 = vmatpush.msra.mxu2 %v117_v27  ;;  %v211_v1 = vld [vmem:[%s471_s8] ss:$0 sm:$0xff] }
  0x1b   :  { %99 = vmatpush.msra.mxu1 %v70_v17  ;;  %173 = vmatpush.msra.mxu3 %v160_v45 }
  0x1c   :  { %135 = vmatpush.msra.mxu2 %v116_v28 }
  0x1d   :  { %100 = vmatpush.msra.mxu1 %v69_v18  ;;  %174 = vmatpush.msra.mxu3 %v159_v46 }
  0x1e   :  { %136 = vmatpush.msra.mxu2 %v115_v29 }
  0x1f   :  { %101 = vmatpush.msra.mxu1 %v68_v19  ;;  %175 = vmatpush.msra.mxu3 %v158_v47 }
  0x20   :  { %137 = vmatpush.msra.mxu2 %v114_v30 }
  0x21   :  { %102 = vmatpush.msra.mxu1 %v67_v20  ;;  %176 = vmatpush.msra.mxu3 %v157_v48 }
  0x22   :  { %138 = vmatpush.msra.mxu2 %v113_v31 }
  0x23   :  { %177 = vmatpush.msra.mxu3 %v156_v49 }
  0x24   :  { %139 = vmatpush.msra.mxu2 %v112_v32 }
  0x25   :  { %178 = vmatpush.msra.mxu3 %v155_v50 }
  0x26   :  { %140 = vmatpush.msra.mxu2 %v111_v33 }
  0x27   :  { %179 = vmatpush.msra.mxu3 %v154_v51 }
  0x28   :  { %141 = vmatpush.msra.mxu2 %v110_v38 }
  0x29   :  { %180 = vmatpush.msra.mxu3 %v153_v52 }
  0x2a   :  { %142 = vmatpush.msra.mxu2 %v109_v39 }
  0x2b   :  { %181 = vmatpush.msra.mxu3 %v152_v53 }
  0x2c   :  { %143 = vmatpush.msra.mxu2 %v108_v40 }
  0x2d   :  { %182 = vmatpush.msra.mxu3 %v151_v58 }
  0x2f   :  { %183 = vmatpush.msra.mxu3 %v150_v59 }
  0x31   :  { %184 = vmatpush.msra.mxu3 %v149_v60 }
  0x86   :  { %v63_v35 = vpop.f32.mrf.mxu0 }
  0x87   :  { %v64_v36 = vadd.f32 %v208_v34, %v63_v35 }
  0x89   :  { %v66_v37 = vmax.f32 %v64_v36, 0.0 }
  0x8b   :  { %103 = vmatmul.f32.vlgmr.msra.gmra.mxu1 %v66_v37 }
 0x108   :  { %v104_v55 = vpop.f32.mrf.mxu1 }
 0x109   :  { %v105_v56 = vadd.f32 %v209_v54, %v104_v55 }
 0x10b   :  { %v107_v57 = vmax.f32 %v105_v56, 0.0 }
 0x10d   :  { %144 = vmatmul.f32.vlgmr.msra.gmra.mxu2 %v107_v57 }
 0x190   :  { %v145_v62 = vpop.f32.mrf.mxu2 }
 0x191   :  { %v146_v63 = vadd.f32 %v210_v61, %v145_v62 }
 0x193   :  { %v148_v0 = vmax.f32 %v146_v63, 0.0 }
 0x195   :  { %185 = vmatmul.f32.vlgmr.msra.gmra.mxu3 %v148_v0 }
 0x218   :  { %v186_v2 = vpop.f32.mrf.mxu3 }
 0x219   :  { %v187_v3 = vadd.f32 %v211_v1, %v186_v2 }
 0x21b   :  { %189 = vst [vmem:[#allocation2] sm:$0xff] %v187_v3 }
 0x21c   :  { %200 = dma.vmem_to_hbm [thread:$0]  %s196_s24, 128, %s198_s27, [#allocation3]  }
 0x21d   :  { %236 = dma.done.wait [#allocation3], 128  }
 0x21e   :  { %237 = vsyncadd [#allocation3], 4294967168 }
 0x21f   :  { %205 = vsyncpa [#allocation3], 1 }

</bundles_post_ra>
